<compile_context>
chip_gen: v6e
topology: v6e:2x2x1
jax: 0.10.0
libtpu: 0.0.40
codegen_flags: <defaults>
</compile_context>

<pallas_src>
import functools

import jax
import jax.numpy as jnp
from jax.experimental import pallas as pl
from jax.experimental.pallas import tpu as pltpu


def _round_up(x, m):
    return ((x + m - 1) // m) * m


def _tagging_kernel(pad_id, compute_loss, *refs):
    if compute_loss:
        h_ref, w_ref, b_ref, mask_ref, lab_ref, prob_ref, parts_ref = refs
    else:
        h_ref, w_ref, b_ref, mask_ref, prob_ref = refs

    # ---- Linear: logits = h @ W^T + b  (bf16 MXU, f32 accumulate; no W transpose) ----
    logits = jax.lax.dot_general(
        h_ref[...], w_ref[...],
        dimension_numbers=(((1,), (1,)), ((), ())),
        preferred_element_type=jnp.float32)                  # [TM, T_pad] f32
    logits = logits + b_ref[...]                             # padded tag cols have -inf bias

    # ---- logits += (1 - mask) * -1e32 (penalize padded sequence positions) ----
    mask = mask_ref[...]                                     # [TM, 1] f32 (1 = real token)
    logits = logits + (1.0 - mask) * jnp.float32(-1e32)

    # ---- row-wise stable softmax; padded tag columns are -inf -> exp == 0 ----
    m = jnp.max(logits, axis=-1, keepdims=True)              # [TM, 1]
    e = jnp.exp(logits - m)                                  # [TM, T_pad]
    denom = jnp.sum(e, axis=-1, keepdims=True)               # [TM, 1]
    prob_ref[...] = (e * pl.reciprocal(denom, approx=True)).astype(prob_ref.dtype)

    if compute_loss:
        # CrossEntropy(ignore_index=pad_id): per-tile partial loss sum & valid count.
        # NOTE: labels outside [0, T) that are not equal to pad_id are not supported
        # (same assumption as the original module where ignore_index == pad_id).
        labels = lab_ref[...]                                # [TM, 1] i32
        tm, tp = logits.shape
        tag_ids = jax.lax.broadcasted_iota(jnp.int32, (tm, tp), 1)
        onehot = tag_ids == labels                           # [TM, T_pad]
        picked = jnp.sum(jnp.where(onehot, logits, 0.0), axis=-1, keepdims=True)
        lse = m + jnp.log(denom)                             # logsumexp(logits) [TM, 1]
        nll = lse - picked                                   # per-row NLL
        valid = (labels != pad_id).astype(jnp.float32)       # ignore_index mask
        loss_sum = jnp.sum(nll * valid, keepdims=True)       # (1, 1)
        cnt = jnp.sum(valid, keepdims=True)                  # (1, 1)
        lane = jax.lax.broadcasted_iota(jnp.int32, (1, 128), 1)
        parts = jnp.where(lane == 0, loss_sum, jnp.where(lane == 1, cnt, 0.0))
        parts_ref[...] = parts.reshape(1, 1, 128)            # lane 0 = sum, lane 1 = count


def tagging_fnn_decoder(hiddens, mask, weight, bias, pad_id, labels=None,
                        *, block_rows=512):
    """hiddens: [B,S,H]; mask: [B,S] (1=token, 0=pad); weight: [T,H]; bias: [T];
    labels: [B,S] int (optional). Returns prob [B,S,T] (and scalar loss if labels given)."""
    B, S, H = hiddens.shape
    T = weight.shape[0]
    N = B * S

    T_pad = _round_up(T, 128)                                # lane-dense tag axis
    TM = _round_up(min(block_rows, max(N, 16)), 16)          # row tile (bf16 sublane = 16)
    N_pad = _round_up(N, TM)
    G = N_pad // TM

    # bf16 inputs for the MXU; padded rows get mask=0 / label=pad_id so they are ignored.
    h = hiddens.reshape(N, H).astype(jnp.bfloat16)
    m = mask.reshape(N, 1).astype(jnp.float32)
    if N_pad != N:
        pad = N_pad - N
        h = jnp.pad(h, ((0, pad), (0, 0)))
        m = jnp.pad(m, ((0, pad), (0, 0)))

    w = weight.astype(jnp.bfloat16)                          # [T, H]; no transpose materialized
    b = bias.astype(jnp.float32).reshape(1, T)
    if T_pad != T:
        w = jnp.pad(w, ((0, T_pad - T), (0, 0)))
        b = jnp.pad(b, ((0, 0), (0, T_pad - T)), constant_values=-jnp.inf)

    compute_loss = labels is not None
    inputs = [h, w, b, m]
    in_specs = [
        pl.BlockSpec((TM, H), lambda i: (i, 0)),             # hiddens tile (pipelined)
        pl.BlockSpec((T_pad, H), lambda i: (0, 0)),          # weight resident
        pl.BlockSpec((1, T_pad), lambda i: (0, 0)),          # bias resident
        pl.BlockSpec((TM, 1), lambda i: (i, 0)),             # mask tile
    ]
    if compute_loss:
        lab = labels.reshape(N, 1).astype(jnp.int32)
        if N_pad != N:
            lab = jnp.pad(lab, ((0, N_pad - N), (0, 0)), constant_values=pad_id)
        inputs.append(lab)
        in_specs.append(pl.BlockSpec((TM, 1), lambda i: (i, 0)))

    out_shapes = [jax.ShapeDtypeStruct((N_pad, T_pad), jnp.float32)]
    out_specs = [pl.BlockSpec((TM, T_pad), lambda i: (i, 0))]
    if compute_loss:
        out_shapes.append(jax.ShapeDtypeStruct((G, 1, 128), jnp.float32))
        out_specs.append(pl.BlockSpec((1, 1, 128), lambda i: (i, 0, 0)))

    # VMEM budget: double-buffered per-step tiles + resident weight/bias, with headroom.
    # Stays well under the 32 MiB scoped default at TM=512 and legal on v7x's 64 MiB.
    step_bytes = TM * H * 2 + 2 * TM * 4 + TM * T_pad * 4 + 128 * 4
    resident_bytes = T_pad * H * 2 + T_pad * 4
    vmem_limit = int(min(56 * 1024 * 1024,
                         max(16 * 1024 * 1024, 3 * (2 * step_bytes + resident_bytes))))

    cost = pl.CostEstimate(
        flops=2 * N_pad * H * T_pad + 8 * N_pad * T_pad,
        transcendentals=N_pad * T_pad + 2 * N_pad,
        bytes_accessed=(N_pad * H * 2 + T_pad * H * 2 + T_pad * 4
                        + 2 * N_pad * 4 + N_pad * T_pad * 4 + G * 128 * 4),
    )

    kernel = functools.partial(_tagging_kernel, pad_id, compute_loss)
    outs = pl.pallas_call(
        kernel,
        out_shape=tuple(out_shapes),
        grid_spec=pltpu.PrefetchScalarGridSpec(
            num_scalar_prefetch=0,
            grid=(G,),
            in_specs=in_specs,
            out_specs=tuple(out_specs)),
        compiler_params=pltpu.CompilerParams(
            dimension_semantics=("parallel",),   # per-tile partial loss => no serial axis
            vmem_limit_bytes=vmem_limit),
        cost_estimate=cost,
    )(*inputs)

    prob = outs[0][:N, :T].reshape(B, S, T)
    if not compute_loss:
        return prob
    parts = outs[1]
    # global mean over valid rows (NaN iff every label == pad_id, matching torch 'mean').
    loss = jnp.sum(parts[:, 0, 0]) / jnp.sum(parts[:, 0, 1])
    return prob, loss


def _reference(hiddens, mask, weight, bias, pad_id, labels):
    # Mirrors the kernel's bf16 input cast so the comparison isolates kernel math.
    h = hiddens.astype(jnp.bfloat16).astype(jnp.float32)
    w = weight.astype(jnp.bfloat16).astype(jnp.float32)
    logits = jnp.einsum("bsh,th->bst", h, w) + bias
    logits = logits + (1.0 - mask)[..., None] * jnp.float32(-1e32)
    prob = jax.nn.softmax(logits, axis=-1)
    flat_logits = logits.reshape(-1, logits.shape[-1])
    flat_labels = labels.reshape(-1)
    lse = jax.scipy.special.logsumexp(flat_logits, axis=-1)
    picked = jnp.take_along_axis(flat_logits, flat_labels[:, None], axis=-1)[:, 0]
    nll = lse - picked
    valid = (flat_labels != pad_id).astype(jnp.float32)
    loss = jnp.sum(nll * valid) / jnp.sum(valid)
    return prob, loss


if __name__ == "__main__":
    B, S, H, T = 2, 8, 32, 16
    pad_id = 0

    key = jax.random.PRNGKey(0)
    k_h, k_w, k_b, k_lab = jax.random.split(key, 4)

    hiddens = jax.random.normal(k_h, (B, S, H), dtype=jnp.float32)

    # deterministic Linear(input_size=H, num_tags=T) init (PyTorch-style uniform)
    bound = 1.0 / (H ** 0.5)
    weight = jax.random.uniform(k_w, (T, H), minval=-bound, maxval=bound, dtype=jnp.float32)
    bias = jax.random.uniform(k_b, (T,), minval=-bound, maxval=bound, dtype=jnp.float32)

    # mask: sequence lengths 6 and 5 (1 = real token, 0 = padding)
    lengths = jnp.array([6, 5], dtype=jnp.int32)
    mask = (jnp.arange(S)[None, :] < lengths[:, None]).astype(jnp.float32)

    # labels: random tags on valid positions, pad_id on padded positions
    labels = jax.random.randint(k_lab, (B, S), minval=1, maxval=T, dtype=jnp.int32)
    labels = jnp.where(mask > 0, labels, pad_id)

    prob, loss = tagging_fnn_decoder(hiddens, mask, weight, bias, pad_id, labels)
    prob_only = tagging_fnn_decoder(hiddens, mask, weight, bias, pad_id)  # inference path
    jax.block_until_ready((prob, loss, prob_only))

    # correctness check vs plain-JAX reference (tolerances cover bf16 MXU inputs,
    # which the reference mirrors, plus the EUP approx reciprocal in the softmax)
    prob_ref, loss_ref = _reference(hiddens, mask, weight, bias, pad_id, labels)
    assert prob.shape == (B, S, T)
    assert prob_only.shape == (B, S, T)
    assert jnp.allclose(prob, prob_ref, atol=5e-3, rtol=5e-3)
    assert jnp.allclose(prob_only, prob_ref, atol=5e-3, rtol=5e-3)
    assert jnp.allclose(loss, loss_ref, atol=2e-3, rtol=2e-3)

    print("KERNEL_OK")
</pallas_src>

<mosaic_0001>
module attributes {stable_mosaic.version = 11 : i64} {
  func.func @_tagging_kernel(%arg0: i32, %arg1: memref<16x32xbf16, #tpu.memory_space<vmem>>, %arg2: memref<128x32xbf16, #tpu.memory_space<vmem>>, %arg3: memref<1x128xf32, #tpu.memory_space<vmem>>, %arg4: memref<16x1xf32, #tpu.memory_space<vmem>>, %arg5: memref<16x1xi32, #tpu.memory_space<vmem>>, %arg6: memref<16x128xf32, #tpu.memory_space<vmem>>, %arg7: memref<1x1x128xf32, #tpu.memory_space<vmem>>) attributes {dimension_semantics = [#tpu.dimension_semantics<parallel>], iteration_bounds = array<i64: 1>, scalar_prefetch = 0 : i64, scratch_operands = 0 : i64, tpu.core_type = #tpu.core_type<tc>, window_params = [{transform_indices = @transform_0, window_bounds = array<i64: 16, 32>}, {pipeline_mode = #tpu.pipeline_mode<synchronous>, transform_indices = @transform_1, window_bounds = array<i64: 128, 32>}, {pipeline_mode = #tpu.pipeline_mode<synchronous>, transform_indices = @transform_2, window_bounds = array<i64: 1, 128>}, {transform_indices = @transform_3, window_bounds = array<i64: 16, 1>}, {transform_indices = @transform_4, window_bounds = array<i64: 16, 1>}, {transform_indices = @transform_5, window_bounds = array<i64: 16, 128>}, {transform_indices = @transform_6, window_bounds = array<i64: 1, 1, 128>}]} {
    %c0 = arith.constant 0 : index
    %c0_0 = arith.constant 0 : index
    %0 = vector.load %arg1[%c0, %c0_0] : memref<16x32xbf16, #tpu.memory_space<vmem>>, vector<16x32xbf16>
    %c0_1 = arith.constant 0 : index
    %c0_2 = arith.constant 0 : index
    %1 = vector.load %arg2[%c0_1, %c0_2] : memref<128x32xbf16, #tpu.memory_space<vmem>>, vector<128x32xbf16>
    %cst = arith.constant dense<0.000000e+00> : vector<16x128xf32>
    %2 = tpu.matmul %0, %1, %cst {dimension_numbers = #tpu.dot_dimension_numbers<[1], [1], [0], [0], [0, 0, 1, 0], [], []>} : vector<16x32xbf16>, vector<128x32xbf16>, vector<16x128xf32> -> vector<16x128xf32>
    %c0_3 = arith.constant 0 : index
    %c0_4 = arith.constant 0 : index
    %3 = vector.load %arg3[%c0_3, %c0_4] : memref<1x128xf32, #tpu.memory_space<vmem>>, vector<1x128xf32>
    %4 = vector.broadcast %3 : vector<1x128xf32> to vector<16x128xf32>
    %5 = arith.addf %2, %4 : vector<16x128xf32>
    %c0_5 = arith.constant 0 : index
    %c0_6 = arith.constant 0 : index
    %6 = vector.load %arg4[%c0_5, %c0_6] : memref<16x1xf32, #tpu.memory_space<vmem>>, vector<16x1xf32>
    %cst_7 = arith.constant 1.000000e+00 : f32
    %7 = vector.broadcast %cst_7 : f32 to vector<16x1xf32>
    %8 = arith.subf %7, %6 : vector<16x1xf32>
    %cst_8 = arith.constant -1.000000e+32 : f32
    %9 = vector.broadcast %cst_8 : f32 to vector<16x1xf32>
    %10 = arith.mulf %8, %9 : vector<16x1xf32>
    %11 = vector.broadcast %10 : vector<16x1xf32> to vector<16x128xf32>
    %12 = arith.addf %5, %11 : vector<16x128xf32>
    %cst_9 = arith.constant dense<0xFF800000> : vector<16xf32>
    %13 = vector.multi_reduction <maximumf>, %12, %cst_9 [1] : vector<16x128xf32> to vector<16xf32>
    %14 = vector.shape_cast %13 : vector<16xf32> to vector<16x1xf32>
    %15 = vector.broadcast %14 : vector<16x1xf32> to vector<16x128xf32>
    %16 = arith.subf %12, %15 : vector<16x128xf32>
    %17 = math.exp %16 : vector<16x128xf32>
    %cst_10 = arith.constant dense<0.000000e+00> : vector<16xf32>
    %18 = vector.multi_reduction <add>, %17, %cst_10 [1] : vector<16x128xf32> to vector<16xf32>
    %19 = vector.shape_cast %18 : vector<16xf32> to vector<16x1xf32>
    %20 = tpu.reciprocal %19 {approx = true} : vector<16x1xf32> -> vector<16x1xf32>
    %21 = vector.broadcast %20 : vector<16x1xf32> to vector<16x128xf32>
    %22 = arith.mulf %17, %21 : vector<16x128xf32>
    %c0_11 = arith.constant 0 : index
    %c0_12 = arith.constant 0 : index
    %23 = vector.load %arg6[%c0_11, %c0_12] : memref<16x128xf32, #tpu.memory_space<vmem>>, vector<16x128xf32>
    tpu.vector_store %arg6[%c0_11, %c0_12], %22 {strides = array<i32>} : memref<16x128xf32, #tpu.memory_space<vmem>>, vector<16x128xf32>,
    %c0_13 = arith.constant 0 : index
    %c0_14 = arith.constant 0 : index
    %24 = vector.load %arg5[%c0_13, %c0_14] : memref<16x1xi32, #tpu.memory_space<vmem>>, vector<16x1xi32>
    %25 = tpu.iota {dimensions = array<i32: 1>} : vector<16x128xi32>
    %26 = vector.broadcast %24 : vector<16x1xi32> to vector<16x128xi32>
    %27 = arith.cmpi eq, %25, %26 : vector<16x128xi32>
    %cst_15 = arith.constant 0.000000e+00 : f32
    %28 = vector.broadcast %cst_15 : f32 to vector<16x128xf32>
    %29 = arith.select %27, %12, %28 : vector<16x128xi1>, vector<16x128xf32>
    %cst_16 = arith.constant dense<0.000000e+00> : vector<16xf32>
    %30 = vector.multi_reduction <add>, %29, %cst_16 [1] : vector<16x128xf32> to vector<16xf32>
    %31 = vector.shape_cast %30 : vector<16xf32> to vector<16x1xf32>
    %32 = math.log %19 : vector<16x1xf32>
    %33 = arith.addf %14, %32 : vector<16x1xf32>
    %34 = arith.subf %33, %31 : vector<16x1xf32>
    %c0_i32 = arith.constant 0 : i32
    %35 = vector.broadcast %c0_i32 : i32 to vector<16x1xi32>
    %36 = arith.cmpi ne, %24, %35 : vector<16x1xi32>
    %37 = arith.extui %36 : vector<16x1xi1> to vector<16x1xi32>
    %38 = arith.sitofp %37 : vector<16x1xi32> to vector<16x1xf32>
    %39 = arith.mulf %34, %38 : vector<16x1xf32>
    %40 = vector.shape_cast %39 : vector<16x1xf32> to vector<1x16x1xf32>
    %cst_17 = arith.constant dense<0.000000e+00> : vector<1xf32>
    %41 = vector.multi_reduction <add>, %40, %cst_17 [1, 2] : vector<1x16x1xf32> to vector<1xf32>
    %42 = vector.shape_cast %41 : vector<1xf32> to vector<1x1x1xf32>
    %43 = vector.extract %42[0, 0, 0] : f32 from vector<1x1x1xf32>
    %44 = vector.broadcast %43 : f32 to vector<1x1xf32>
    %45 = vector.shape_cast %38 : vector<16x1xf32> to vector<1x16x1xf32>
    %cst_18 = arith.constant dense<0.000000e+00> : vector<1xf32>
    %46 = vector.multi_reduction <add>, %45, %cst_18 [1, 2] : vector<1x16x1xf32> to vector<1xf32>
    %47 = vector.shape_cast %46 : vector<1xf32> to vector<1x1x1xf32>
    %48 = vector.extract %47[0, 0, 0] : f32 from vector<1x1x1xf32>
    %49 = vector.broadcast %48 : f32 to vector<1x1xf32>
    %50 = tpu.iota {dimensions = array<i32: 1>} : vector<1x128xi32>
    %c0_i32_19 = arith.constant 0 : i32
    %51 = vector.broadcast %c0_i32_19 : i32 to vector<1x128xi32>
    %52 = arith.cmpi eq, %50, %51 : vector<1x128xi32>
    %c1_i32 = arith.constant 1 : i32
    %53 = vector.broadcast %c1_i32 : i32 to vector<1x128xi32>
    %54 = arith.cmpi eq, %50, %53 : vector<1x128xi32>
    %cst_20 = arith.constant 0.000000e+00 : f32
    %55 = vector.shape_cast %49 : vector<1x1xf32> to vector<1x1xf32>
    %56 = vector.broadcast %55 : vector<1x1xf32> to vector<1x128xf32>
    %57 = vector.broadcast %cst_20 : f32 to vector<1x128xf32>
    %58 = arith.select %54, %56, %57 : vector<1x128xi1>, vector<1x128xf32>
    %59 = vector.shape_cast %44 : vector<1x1xf32> to vector<1x1xf32>
    %60 = vector.broadcast %59 : vector<1x1xf32> to vector<1x128xf32>
    %61 = arith.select %52, %60, %58 : vector<1x128xi1>, vector<1x128xf32>
    %62 = vector.shape_cast %61 : vector<1x128xf32> to vector<1x1x128xf32>
    %c0_21 = arith.constant 0 : index
    %c0_22 = arith.constant 0 : index
    %c0_23 = arith.constant 0 : index
    %63 = vector.load %arg7[%c0_21, %c0_22, %c0_23] : memref<1x1x128xf32, #tpu.memory_space<vmem>>, vector<1x1x128xf32>
    tpu.vector_store %arg7[%c0_21, %c0_22, %c0_23], %62 {strides = array<i32>} : memref<1x1x128xf32, #tpu.memory_space<vmem>>, vector<1x1x128xf32>,
    return
  }
  func.func @transform_0(%arg0: i32) -> (i32, i32) {
    %c0_i32 = arith.constant 0 : i32
    %c0_i32_0 = arith.constant 0 : i32
    return %arg0, %c0_i32 : i32, i32
  }
  func.func @transform_1(%arg0: i32) -> (i32, i32) {
    %c0_i32 = arith.constant 0 : i32
    %c0_i32_0 = arith.constant 0 : i32
    %c0_i32_1 = arith.constant 0 : i32
    return %c0_i32, %c0_i32_0 : i32, i32
  }
  func.func @transform_2(%arg0: i32) -> (i32, i32) {
    %c0_i32 = arith.constant 0 : i32
    %c0_i32_0 = arith.constant 0 : i32
    %c0_i32_1 = arith.constant 0 : i32
    return %c0_i32, %c0_i32_0 : i32, i32
  }
  func.func @transform_3(%arg0: i32) -> (i32, i32) {
    %c0_i32 = arith.constant 0 : i32
    %c0_i32_0 = arith.constant 0 : i32
    return %arg0, %c0_i32 : i32, i32
  }
  func.func @transform_4(%arg0: i32) -> (i32, i32) {
    %c0_i32 = arith.constant 0 : i32
    %c0_i32_0 = arith.constant 0 : i32
    return %arg0, %c0_i32 : i32, i32
  }
  func.func @transform_5(%arg0: i32) -> (i32, i32) {
    %c0_i32 = arith.constant 0 : i32
    %c0_i32_0 = arith.constant 0 : i32
    return %arg0, %c0_i32 : i32, i32
  }
  func.func @transform_6(%arg0: i32) -> (i32, i32, i32) {
    %c0_i32 = arith.constant 0 : i32
    %c0_i32_0 = arith.constant 0 : i32
    %c0_i32_1 = arith.constant 0 : i32
    return %arg0, %c0_i32, %c0_i32_0 : i32, i32, i32
  }
}

</mosaic_0001>

<bundles_post_ra>
// kernel: tpu_custom_call.1
= control target key start
LH: loop header
LB: loop body
LE: loop exit
PB: predicated region body
PF: predicated region fallthrough
CT: control target
= control target key end

     0   :  { %12 = vsyncpa [#allocation3], 0  ;;  %v418_v1 = vmov 0.0   ;;  %vm95_vm0 = vcmask 261120   ;;  %vm419_vm1 = vmmov 0   ;;  %v420_v7 = vmov 0   ;;  %s538_s0 = inlined_call_operand.vmem [shape: bf16[16,32], index: 0, kind: input, shape index: {}]   ;;  %s539_s1 = inlined_call_operand.vmem [shape: bf16[128,32], index: 1, kind: input, shape index: {}]   ;;  %s540_s2 = inlined_call_operand.vmem [shape: f32[1,128], index: 2, kind: input, shape index: {}]   ;;  %s541_s3 = inlined_call_operand.vmem [shape: f32[16,1], index: 3, kind: input, shape index: {}]   ;;  %s542_s4 = inlined_call_operand.vmem [shape: s32[16,1], index: 4, kind: input, shape index: {}]   ;;  %s543_s5 = inlined_call_operand.hbm [shape: f32[16,128], index: 5, kind: output, shape index: {0}]   ;;  %s544_s6 = inlined_call_operand.hbm [shape: f32[1,1,128], index: 6, kind: output, shape index: {1}]  }
   0x1   :  { %v353_v0 = vld [vmem:[%s539_s1 + $0x38] sm:$0xff]   ;;  %320 = vmatprep.subr.bf16.mxu0 %v418_v1  ;;  %v354_v3 = vld [vmem:[%s539_s1 + $0x30] sm:$0xff]   ;;  %336 = vmatprep.mubr.msk.bf16.mxu0 %vm419_vm1, %v418_v1  ;;  %v164_v5 = vld [vmem:[%s541_s3] sm:$0xff] }
   0x2   :  { %v121_v2 = vsel %vm95_vm0, %v353_v0, 0  ;;  %v118_v4 = vsel %vm95_vm0, %v354_v3, 0  ;;  %v165_v6 = vld [vmem:[%s541_s3 + $0x8] sm:$0xff]  ;;  %351 = vset.pattern.permute.xlu0 %v420_v7  ;;  %v166_v8 = vsub.f32 1.0, %v164_v5  ;;  %352 = vset.pattern.permute.xlu1 %v420_v7 }
   0x3   :  { %321 = vmatpush3.bf16.xpose.msra.mxu0 %v121_v2  ;;  %v167_v9 = vsub.f32 1.0, %v165_v6 }
   0x4   :  { %322 = vmatprep.subr.bf16.mxu0 %v418_v1 }
   0x5   :  { %13 = vsyncpa [#allocation5], 0  ;;  %v355_v10 = vld [vmem:[%s539_s1 + $0x28] sm:$0xff]   ;;  %v168_v11 = vmul.f32 -1e+32, %v166_v8  ;;  %v485_v14 = vld [vmem:[%s542_s4] sm:$0xff]  ;;  %v204_v44 = vlaneseq }
   0x6   :  { %v169_v12 = vmul.f32 -1e+32, %v167_v9  ;;  %v115_v13 = vsel %vm95_vm0, %v355_v10, 0  ;;  %v356_v15 = vld [vmem:[%s539_s1 + $0x20] sm:$0xff]   ;;  %v357_v17 = vld [vmem:[%s539_s1 + $0x18] sm:$0xff]   ;;  %v358_v19 = vld [vmem:[%s539_s1 + $0x10] sm:$0xff]  }
   0x7   :  { %172 = vperm.xlu0 %351, %v168_v11   ;;  %v112_v16 = vsel %vm95_vm0, %v356_v15, 0  ;;  %v109_v18 = vsel %vm95_vm0, %v357_v17, 0  ;;  %v106_v20 = vsel %vm95_vm0, %v358_v19, 0  ;;  %v359_v21 = vld [vmem:[%s539_s1 + $0x8] sm:$0xff]   ;;  %v360_v23 = vld [vmem:[%s539_s1] sm:$0xff]   ;;  %v523_v45 = vand.u32 127, %v204_v44 }
   0x8   :  { %v103_v22 = vsel %vm95_vm0, %v359_v21, 0  ;;  %v100_v24 = vsel %vm95_vm0, %v360_v23, 0  ;;  %v361_v25 = vld [vmem:[%s538_s0] sm:$0xff]   ;;  %v203_v37 = vld [vmem:[%s542_s4 + $0x8] sm:$0xff]  ;;  %vm228_vm4 = vcmp.ne.s32.totalorder %v485_v14, 0  ;;  %vm236_vm6 = vcmask 7168  }
   0x9   :  { %v298_v26 = vld [vmem:[%s540_s2] ss:$0 sm:$0xff]  ;;  %vm229_vm5 = vcmp.ne.s32.totalorder %v203_v37, 0  ;;  %v309_v2 = vsel %vm228_vm4, 1.0, %v418_v1  ;;  %s421_s2 = smov [#allocation2]  }
   0xa   :  { %v249_v11 = vsel %vm236_vm6, %v309_v2, 0.0  ;;  %s273_s4 = sshll.u32 %s421_s2, 4  ;;  %s274_s4 = int_to_ptr.vmem [resolvable:$true] %s273_s4 }
   0xb   :  { %323 = vmatpush3.bf16.xpose.msra.mxu0 %v118_v4  ;;  %177 = vperm.xlu0 %351, %v169_v12   ;;  %v310_v4 = vsel %vm229_vm5, 1.0, %v418_v1  ;;  %s374_s22 = scalar_lea.vmem %s274_s4, 256  ;;  %p379_p1 = scmp.lt.s32.totalorder %s274_s4, %s274_s4 }
   0xc   :  { %324 = vmatprep.subr.bf16.mxu0 %v418_v1  ;;  %v250_v12 = vsel %vm236_vm6, %v310_v4, 0.0  ;;  %p375_p0 = scmp.ne.s32.totalorder %s274_s4, %s374_s22  ;;  %p380_p2 = scmp.lt.s32.totalorder %s374_s22, %s374_s22 }
   0xe   :  { %p381_p3 = por %p380_p2, %p379_p1 }
   0xf   :  { %207 = vperm.xlu0 %351, %v485_v14   ;;  %v251_v14 = vadd.f32 %v250_v12, %v249_v11 }
  0x10   :  { %p382_p4 = pnand %p381_p3, %p375_p0 }
  0x13   :  { %325 = vmatpush3.bf16.xpose.msra.mxu0 %v115_v13 }
  0x14   :  { %326 = vmatprep.subr.bf16.mxu0 %v418_v1 }
  0x1b   :  { %327 = vmatpush3.bf16.xpose.msra.mxu0 %v112_v16 }
  0x1c   :  { %328 = vmatprep.subr.bf16.mxu0 %v418_v1 }
  0x23   :  { %329 = vmatpush3.bf16.xpose.msra.mxu0 %v109_v18 }
  0x24   :  { %330 = vmatprep.subr.bf16.mxu0 %v418_v1 }
  0x2b   :  { %331 = vmatpush3.bf16.xpose.msra.mxu0 %v106_v20 }
  0x2c   :  { %332 = vmatprep.subr.bf16.mxu0 %v418_v1 }
  0x33   :  { %333 = vmatpush3.bf16.xpose.msra.mxu0 %v103_v22 }
  0x34   :  { %334 = vmatprep.subr.bf16.mxu0 %v418_v1 }
  0x3b   :  { %335 = vmatpush3.bf16.xpose.msra.mxu0 %v100_v24 }
  0x42   :  { %337 = vmatmul.mubr.msk.bf16.vlgmr.msra.gmra.mxu0 %vm95_vm0, %v361_v25 }
  0x82   :  { %v173_v27 = vpop.permute.xlu0 %172 }
  0x86   :  { %v178_v34 = vpop.permute.xlu0 %177 }
  0x8a   :  { %v208_v46 = vpop.permute.xlu0 %207 }
  0x8b   :  { %vm212_vm2 = vcmp.eq.s32.totalorder %v523_v45, %v208_v46 }
 0x102   :  { %v157_v28 = vpop.f32.mrf.mxu0 }
 0x103   :  { %v158_v29 = vadd.f32 %v298_v26, %v157_v28 }
 0x104   :  { %v338_v30 = vpop.f32.mrf.mxu0 }
 0x105   :  { %v180_v31 = vadd.f32 %v173_v27, %v158_v29 }
 0x106   :  { %v160_v32 = vpop.f32.mrf.mxu0 }
 0x107   :  { %v161_v33 = vadd.f32 %v298_v26, %v160_v32  ;;  %182 = vmax.xlane.f32.xlu1 %v180_v31  ;;  %v214_v50 = vsel %vm212_vm2, %v180_v31, 0.0 }
 0x108   :  { %v339_v35 = vpop.f32.mrf.mxu0 }
 0x109   :  { %v181_v36 = vadd.f32 %v178_v34, %v161_v33 }
 0x10b   :  { %184 = vmax.xlane.f32.xlu1 %v181_v36 }
 0x11c   :  { %210 = vperm.xlu1 %352, %v203_v37  }
 0x190   :  { %v183_v38 = vpop.xlane.xlu1 %182 }
 0x191   :  { %v186_v39 = vsub.f32 %v180_v31, %v183_v38 }
 0x193   :  { %v188_v40 = vmul.f32 1.442695, %v186_v39 }
 0x194   :  { %v185_v41 = vpop.xlane.xlu1 %184 }
 0x195   :  { %362 = vpow2.f32 %v188_v40  ;;  %v187_v42 = vsub.f32 %v181_v36, %v185_v41 }
 0x197   :  { %v190_v43 = vmul.f32 1.442695, %v187_v42 }
 0x198   :  { %v211_v48 = vpop.permute.xlu1 %210 }
 0x199   :  { %364 = vpow2.f32 %v190_v43  ;;  %vm213_vm3 = vcmp.eq.s32.totalorder %v523_v45, %v211_v48 }
 0x19a   :  { %v215_v51 = vsel %vm213_vm3, %v181_v36, 0.0 }
 0x1a2   :  { %v363_v47 = vpop.eup %362 }
 0x1a3   :  { %192 = vadd.xlane.f32.xlu0 %v363_v47 }
 0x1a6   :  { %v365_v49 = vpop.eup %364 }
 0x1a7   :  { %216 = vadd.xlane.f32.xlu0 %v214_v50  ;;  %194 = vadd.xlane.f32.xlu1 %v365_v49 }
 0x1ab   :  { %218 = vadd.xlane.f32.xlu0 %v215_v51 }
 0x22c   :  { %v193_v52 = vpop.xlane.xlu0 %192 }
 0x22d   :  { %366 = vrcp.f32 %v193_v52 }
 0x22e   :  { %368 = vlog2.f32 %v193_v52 }
 0x230   :  { %v195_v53 = vpop.xlane.xlu1 %194  ;;  %v217_v58 = vpop.xlane.xlu0 %216 }
 0x231   :  { %370 = vrcp.f32 %v195_v53 }
 0x232   :  { %372 = vlog2.f32 %v195_v53 }
 0x234   :  { %v219_v5 = vpop.xlane.xlu0 %218 }
 0x23a   :  { %v367_v54 = vpop.eup %366 }
 0x23b   :  { %v369_v55 = vpop.eup %368  ;;  %v198_v56 = vmul.f32 %v367_v54, %v363_v47 }
 0x23c   :  { %v221_v57 = vmul.f32 0.6931472, %v369_v55 }
 0x23d   :  { %200 = vst [vmem:[#allocation2] sm:$0xff] %v198_v56 }
 0x23e   :  { %v371_v59 = vpop.eup %370  ;;  %v224_v60 = vadd.f32 %v221_v57, %v183_v38 }
 0x23f   :  { %v373_v61 = vpop.eup %372  ;;  %v199_v62 = vmul.f32 %v371_v59, %v365_v49 }
 0x240   :  { %v226_v63 = vsub.f32 %v224_v60, %v217_v58  ;;  %v223_v0 = vmul.f32 0.6931472, %v373_v61 }
 0x241   :  { %201 = vst [vmem:[#allocation2 + $0x8] sm:$0xff] %v199_v62 }
 0x242   :  { %v225_v3 = vadd.f32 %v223_v0, %v185_v41  ;;  %v234_v6 = vmul.f32 %v309_v2, %v226_v63 }
 0x244   :  { %v227_v7 = vsub.f32 %v225_v3, %v219_v5  ;;  %v237_v9 = vsel %vm236_vm6, %v234_v6, 0.0 }
 0x246   :  { %v235_v8 = vmul.f32 %v310_v4, %v227_v7 }
 0x248   :  { %v238_v10 = vsel %vm236_vm6, %v235_v8, 0.0 }
 0x249   :  { %v239_v13 = vadd.f32 %v238_v10, %v237_v9 }
 0x24b   :  { %240 = vadd.xlane.f32.xlu0 %v239_v13 }
 0x24f   :  { %252 = vadd.xlane.f32.xlu0 %v251_v14 }
 0x250   :  { %385 = shalt.err (!%p382_p4)
}
 0x251   :  { %s422_s23 = smov 128   ;;  %s423_s24 = smov 8   ;;  %vm262_vm7 = vcmp.eq.s32.totalorder %v523_v45, 1  ;;  %vm261_vm8 = vcmp.eq.s32.totalorder %v523_v45, 0 }
 0x252   :  { %279 = dma.vmem_to_hbm [thread:$0]  %s274_s4, 256, %s543_s5, [#allocation3], %s422_s23, %s422_s23, %s423_s24  }
 0x253   :  { %s424_s5 = smov [#allocation4]  }
 0x254   :  { %s286_s28 = sshll.u32 %s424_s5, 4  ;;  %s287_s28 = int_to_ptr.vmem [resolvable:$true] %s286_s28 }
 0x255   :  { %s394_s30 = scalar_lea.vmem %s287_s28, 16  ;;  %s398_s3 = scalar_lea.vmem %s287_s28, 32 }
 0x256   :  { %p395_p5 = scmp.ne.s32.totalorder %s287_s28, %s394_s30  ;;  %p399_p6 = scmp.lt.s32.totalorder %s287_s28, %s287_s28 }
 0x257   :  { %p400_p7 = scmp.lt.s32.totalorder %s398_s3, %s394_s30 }
 0x259   :  { %p401_p8 = por %p400_p7, %p399_p6 }
 0x25b   :  { %p402_p9 = pnand %p401_p8, %p395_p5 }
 0x2d4   :  { %v241_v1 = vpop.xlane.xlu0 %240 }
 0x2d5   :  { %v242_v15 = vrot.slane %v241_v1, 4 }
 0x2d7   :  { %v243_v16 = vadd.f32 %v242_v15, %v241_v1 }
 0x2d8   :  { %v253_v17 = vpop.xlane.xlu0 %252 }
 0x2d9   :  { %v244_v18 = vrot.slane %v243_v16, 2  ;;  %v254_v19 = vrot.slane %v253_v17, 4 }
 0x2db   :  { %v255_v20 = vadd.f32 %v254_v19, %v253_v17  ;;  %v245_v21 = vadd.f32 %v244_v18, %v243_v16 }
 0x2dd   :  { %v256_v22 = vrot.slane %v255_v20, 2  ;;  %v246_v23 = vrot.slane %v245_v21, 1 }
 0x2df   :  { %v257_v24 = vadd.f32 %v256_v22, %v255_v20  ;;  %v247_v25 = vadd.f32 %v246_v23, %v245_v21 }
 0x2e1   :  { %340 = vpush %v247_v25  ;;  %v258_v26 = vrot.slane %v257_v24, 1 }
 0x2e3   :  { %v259_v27 = vadd.f32 %v258_v26, %v257_v24 }
 0x2e5   :  { %342 = vpush %v259_v27 }
 0x312   :  { %s341_s27 = spop %340 }
 0x313   :  { %v265_v29 = vstv %s341_s27 }
 0x316   :  { %s343_s29 = spop %342 }
 0x317   :  { %v263_v28 = vstv %s343_s29 }
 0x318   :  { %v264_v30 = vsel %vm262_vm7, %v263_v28, 0.0 }
 0x319   :  { %v266_v31 = vsel %vm261_vm8, %v265_v29, %v264_v30 }
 0x31a   :  { %267 = vst [vmem:[#allocation4] sm:$0x1] %v266_v31 }
 0x31b   :  { %405 = shalt.err (!%p402_p9)
}
 0x31c   :  { %289 = dma.vmem_to_hbm [thread:$0]  %s287_s28, 16, %s544_s6, [#allocation5]  }
 0x31d   :  { %414 = dma.done.wait [#allocation3], 256  }
 0x31e   :  { %415 = vsyncadd [#allocation3], 4294967040 }
 0x31f   :  { %416 = dma.done.wait [#allocation5], 16  }
 0x320   :  { %417 = vsyncadd [#allocation5], 4294967280 }
 0x321   :  { %296 = vsyncpa [#allocation3], 1 }
 0x322   :  { %297 = vsyncpa [#allocation5], 1 }

</bundles_post_ra>
